<compile_context>
chip_gen: v7x
topology: tpu7x:2x2x1
jax: 0.10.0
libtpu: 0.0.40
codegen_flags: <defaults>
</compile_context>

<pallas_src>
import jax
import jax.numpy as jnp
from jax.experimental import pallas as pl
from jax.experimental.pallas import tpu as pltpu


def _logreg_kernel(x_ref, w_ref, b_ref, o_ref):
    # x_ref: (tb, F) tile, w_ref: (1, F) lane-dense row (resident), b_ref: (1,) in SMEM
    x = x_ref[...].astype(jnp.float32)
    w = w_ref[...].astype(jnp.float32)
    # VPU multiply + lane (XLU) reduction instead of an N=1 MXU matmul.
    logits = jnp.sum(x * w, axis=-1, keepdims=True) + b_ref[0]
    o_ref[...] = jax.nn.sigmoid(logits).astype(o_ref.dtype)


def _pick_block_batch(B, F, itemsize, sublane):
    # Aim for ~4 MiB x-tiles: big enough to reach ~85% of HBM roofline, small enough
    # that 2x (double buffer) fits every generation's default scoped VMEM
    # (v5e 16 MiB, v6e/v7x 32 MiB; v7x physical VMEM is only 64 MiB).
    target_tile_bytes = 4 * 1024 * 1024
    tb = max(sublane, target_tile_bytes // (F * itemsize))
    # Keep a few grid steps so BlockSpec pipelining overlaps DMA with compute and
    # the "parallel" batch axis can be sharded across v7x's 2 TensorCores.
    tb = min(tb, max(sublane, B // 4))
    tb = min(tb, B)
    if tb < B:
        tb = max(sublane, (tb // sublane) * sublane)  # (8,128) / (16,128) rule
    return int(tb)


def logistic_regression(x, w, b, *, block_batch=None):
    """x: (B, F); w: (1, F) (torch nn.Linear weight layout); b: (1,). Returns (B, 1)."""
    B, F = x.shape
    assert w.shape == (1, F), f"expected weight shape (1, {F}), got {w.shape}"
    b = jnp.asarray(b, dtype=jnp.float32).reshape((1,))

    itemsize = jnp.dtype(x.dtype).itemsize
    sublane = 8 if itemsize >= 4 else 16
    if block_batch is None:
        tb = _pick_block_batch(B, F, itemsize, sublane)
    else:
        tb = min(int(block_batch), B)
        if tb < B:
            tb = max(sublane, (tb // sublane) * sublane)
    num_tiles = pl.cdiv(B, tb)  # partial tail blocks are padded/masked by Pallas

    grid_spec = pltpu.PrefetchScalarGridSpec(
        num_scalar_prefetch=0,
        grid=(num_tiles,),
        in_specs=[
            pl.BlockSpec((tb, F), lambda i: (i, 0)),                 # x tile (double-buffered)
            pl.BlockSpec((1, F), lambda i: (0, 0)),                  # weight row, stays resident
            pl.BlockSpec(memory_space=pltpu.MemorySpace.SMEM),       # bias scalar in SMEM
        ],
        out_specs=pl.BlockSpec((tb, 1), lambda i: (i, 0)),
    )
    # TODO(synk): for very small F a lane-dense (num_tiles, tb) output slab would avoid
    # masked 1-lane stores; output bytes are <1% of traffic here so kept (B, 1).
    return pl.pallas_call(
        _logreg_kernel,
        out_shape=jax.ShapeDtypeStruct((B, 1), x.dtype),
        grid_spec=grid_spec,
        compiler_params=pltpu.CompilerParams(
            dimension_semantics=("parallel",),
        ),
        cost_estimate=pl.CostEstimate(
            flops=2 * B * F,
            transcendentals=B,
            bytes_accessed=B * F * itemsize + F * itemsize + B * itemsize + 4,
        ),
    )(x, w, b)


if __name__ == "__main__":
    key = jax.random.PRNGKey(0)
    kx, kw, kb = jax.random.split(key, 3)

    batch, n_features = 2048, 128  # small, but large enough to exercise batch tiling (grid > 1)

    # torch nn.Linear layout: weight (1, n_features), bias (1,)
    x = jax.random.normal(kx, (batch, n_features), dtype=jnp.float32)
    w = jax.random.normal(kw, (1, n_features), dtype=jnp.float32) * 0.1
    b = jax.random.normal(kb, (1,), dtype=jnp.float32) * 0.1

    out = jax.block_until_ready(logistic_regression(x, w, b))

    # Reference (same math as torch.sigmoid(linear(x))), kept as elementwise f32
    ref = jax.nn.sigmoid(jnp.sum(x * w, axis=-1, keepdims=True) + b)
    assert out.shape == (batch, 1)
    assert jnp.allclose(out, ref, atol=1e-5, rtol=1e-5)

    # bf16 input path (halves the HBM read traffic); accumulation stays f32 in-kernel.
    out_bf16 = jax.block_until_ready(
        logistic_regression(x.astype(jnp.bfloat16), w.astype(jnp.bfloat16), b)
    )
    assert out_bf16.shape == (batch, 1)
    assert jnp.allclose(out_bf16.astype(jnp.float32), ref, atol=2e-2, rtol=2e-2)

    print("KERNEL_OK")
</pallas_src>

<mosaic_0001>
module attributes {stable_mosaic.version = 11 : i64} {
  func.func @_logreg_kernel(%arg0: i32, %arg1: memref<512x128xf32, #tpu.memory_space<vmem>>, %arg2: memref<1x128xf32, #tpu.memory_space<vmem>>, %arg3: memref<1xf32, #tpu.memory_space<smem>>, %arg4: memref<512x1xf32, #tpu.memory_space<vmem>>) attributes {dimension_semantics = [#tpu.dimension_semantics<parallel>], iteration_bounds = array<i64: 4>, scalar_prefetch = 0 : i64, scratch_operands = 0 : i64, tpu.core_type = #tpu.core_type<tc>, window_params = [{transform_indices = @transform_0, window_bounds = array<i64: 512, 128>}, {pipeline_mode = #tpu.pipeline_mode<synchronous>, transform_indices = @transform_1, window_bounds = array<i64: 1, 128>}, {transform_indices = @transform_2, window_bounds = array<i64: 1>}, {transform_indices = @transform_3, window_bounds = array<i64: 512, 1>}]} {
    %c0 = arith.constant 0 : index
    %c0_0 = arith.constant 0 : index
    %0 = vector.load %arg1[%c0, %c0_0] : memref<512x128xf32, #tpu.memory_space<vmem>>, vector<512x128xf32>
    %c0_1 = arith.constant 0 : index
    %c0_2 = arith.constant 0 : index
    %1 = vector.load %arg2[%c0_1, %c0_2] : memref<1x128xf32, #tpu.memory_space<vmem>>, vector<1x128xf32>
    %2 = vector.broadcast %1 : vector<1x128xf32> to vector<512x128xf32>
    %3 = arith.mulf %0, %2 : vector<512x128xf32>
    %cst = arith.constant dense<0.000000e+00> : vector<512xf32>
    %4 = vector.multi_reduction <add>, %3, %cst [1] : vector<512x128xf32> to vector<512xf32>
    %5 = vector.shape_cast %4 : vector<512xf32> to vector<512x1xf32>
    %c0_3 = arith.constant 0 : index
    %6 = memref.load %arg3[%c0_3] : memref<1xf32, #tpu.memory_space<smem>>
    %7 = vector.broadcast %6 : f32 to vector<512x1xf32>
    %8 = arith.addf %5, %7 : vector<512x1xf32>
    %9 = arith.negf %8 : vector<512x1xf32>
    %10 = math.exp %9 : vector<512x1xf32>
    %cst_4 = arith.constant 1.000000e+00 : f32
    %11 = vector.broadcast %cst_4 : f32 to vector<512x1xf32>
    %12 = arith.addf %11, %10 : vector<512x1xf32>
    %13 = arith.divf %11, %12 : vector<512x1xf32>
    %c0_5 = arith.constant 0 : index
    %c0_6 = arith.constant 0 : index
    %14 = vector.load %arg4[%c0_5, %c0_6] : memref<512x1xf32, #tpu.memory_space<vmem>>, vector<512x1xf32>
    tpu.vector_store %arg4[%c0_5, %c0_6], %13 {strides = array<i32>} : memref<512x1xf32, #tpu.memory_space<vmem>>, vector<512x1xf32>,
    return
  }
  func.func @transform_0(%arg0: i32) -> (i32, i32) {
    %c0_i32 = arith.constant 0 : i32
    %c0_i32_0 = arith.constant 0 : i32
    return %arg0, %c0_i32 : i32, i32
  }
  func.func @transform_1(%arg0: i32) -> (i32, i32) {
    %c0_i32 = arith.constant 0 : i32
    %c0_i32_0 = arith.constant 0 : i32
    %c0_i32_1 = arith.constant 0 : i32
    return %c0_i32, %c0_i32_0 : i32, i32
  }
  func.func @transform_2(%arg0: i32) -> i32 {
    %c0_i32 = arith.constant 0 : i32
    %c0_i32_0 = arith.constant 0 : i32
    return %c0_i32 : i32
  }
  func.func @transform_3(%arg0: i32) -> (i32, i32) {
    %c0_i32 = arith.constant 0 : i32
    %c0_i32_0 = arith.constant 0 : i32
    return %arg0, %c0_i32 : i32, i32
  }
}

</mosaic_0001>

<bundles_post_ra>
// kernel: tpu_custom_call.1
= control target key start
LH: loop header
LB: loop body
LE: loop exit
PB: predicated region body
PF: predicated region fallthrough
CT: control target
= control target key end

     0   :  { %s1948_s0 = inlined_call_operand.hbm [shape: f32[2048,128], index: 0, kind: input, shape index: {}]   ;;  %s1949_s1 = inlined_call_operand.vmem [shape: f32[1,128], index: 1, kind: input, shape index: {}]   ;;  %s1950_s2 = inlined_call_operand.<no memory space> [shape: f32[1], index: 2, kind: input, shape index: {}]   ;;  %s1951_s3 = inlined_call_operand.vmem [shape: f32[2048,1], index: 3, kind: output, shape index: {}]  }
   0x1   :  { %8 = sst [smem:[#allocation2]] %s1950_s2 }
   0x2   :  { %9 = vsyncpa [#allocation4], 0 }
   0x3   :  { %11 = vsyncpa [#allocation4 + $0x1], 0  ;;  %s1507_s14 = smov 0   ;;  %s1509_s15 = smov 0  }
   0x4   :  { %s1511_s16 = smov 0   ;;  %s1513_s17 = smov 0  }
   0x5 LB: > { %s1039_s2 = sadd.s32 4294967295, %s1479_s17   ;;  %s1527_s18 = sadd.s32 1, %s1479_s17   ;;  %s1479_s17 = sphi %s1513_s17, %s1958_s17   ;;  %s1475_s16 = sphi %s1511_s16, %s1957_s16   ;;  %s1471_s15 = sphi %s1509_s15, %s1956_s15   ;;  %s1467_s14 = sphi %s1507_s14, %s1955_s14  }
   0x6   : > { %s21_s19 = ssub.s32 %s1479_s17, %s1527_s18  ;;  %s24_s20 = sadd.s32 1, %s1475_s16 }
   0x7   : > { %p22_p0 = scmp.eq.s32.totalorder %s21_s19, 0  ;;  %p31_p1 = scmp.ne.s32.totalorder %s1475_s16, %s1471_s15 }
   0x8   : > { %p32_p2 = scmp.eq.s32.totalorder %s1479_s17, 0  ;;  %p37_p3 = scmp.ne.s32.totalorder %s1471_s15, %s1467_s14 }
   0x9   : > { %s1537_s21 = scalar_select %p22_p0, %s1475_s16, %s24_s20  }
   0xa   : > { %p33_p4 = por %p32_p2, %p31_p1  ;;  %p38_p5 = scmp.eq.s32.totalorder %s1039_s2, 0 }
   0xb   : > { %p1124_p6 = scmp.lt.s32.totalorder %s1479_s17, 4  ;;  %s135_s23 = sand.u32 1, %s1475_s16  }
   0xc   : > { %p1542_p7 = por %p38_p5, %p37_p3  ;;  %s1043_s24 = sshll.u32 %s135_s23, 9 }
   0xd   : > { %s1117_s25 = sshll.u32 %s1479_s17, 13  ;;  %s139_s29 = scalar_lea.vmem [#allocation3], %s1043_s24 }
   0xe   : > { %s1551_s28 = scalar_lea.hbm %s1948_s0, %s1117_s25  ;;  %s146_s30 = sshll.u32 %s139_s29, 4  ;;  %s1553_s30 = int_to_ptr.vmem [resolvable:$true] %s146_s30 }
   0xf   : > { %p1555_p8 = pnand %p1124_p6, %p33_p4  ;;  %s1560_s5 = scalar_lea.sflag [#allocation4], %s135_s23 }
  0x10   : > { %s1415_s6 = scalar_lea.hbm %s1551_s28, 8192  ;;  %s1420_s9 = scalar_lea.hbm %s1948_s0, 32768 }
  0x11   : > { %p1416_p10 = scmp.ne.s32.totalorder %s1551_s28, %s1415_s6  ;;  %p1417_p11 = pneg %p1555_p8 }
  0x12   : > { %p1421_p0 = scmp.lt.u32.totalorder %s1551_s28, %s1948_s0  ;;  %p1422_p1 = scmp.lt.u32.totalorder %s1420_s9, %s1415_s6 }
  0x13   : > { %p1418_p12 = pnand %p1417_p11, %p1416_p10  ;;  %p1424_p3 = scmp.lt.u32.totalorder %s1415_s6, %s1551_s28 }
  0x14   : > { %p1423_p2 = por %p1422_p1, %p1421_p0 }
  0x15   : > { %p1419_p13 = pneg %p1418_p12 }
  0x16   : > { %p1425_p4 = por %p1424_p3, %p1423_p2 }
  0x18   : > { %p1426_p5 = pnand %p1425_p4, %p1419_p13 }
  0x1a   : > { %1429 = shalt.err (!%p1426_p5)
}
  0x1b   : > { %s1430_s12 = scalar_lea.vmem %s1553_s30, 8192  ;;  %s1481_s13 = smov [#allocation3]  }
  0x1c   : > { %p1431_p6 = scmp.ne.s32.totalorder %s1553_s30, %s1430_s12  ;;  %s1435_s14 = sshll.u32 %s1481_s13, 4  ;;  %s1436_s14 = int_to_ptr.vmem [resolvable:$false] %s1435_s14 }
  0x1d   : > { %s1437_s19 = scalar_lea.vmem %s1436_s14, 16384  ;;  %p1438_p9 = scmp.lt.s32.totalorder %s1553_s30, %s1436_s14 }
  0x1e   : > { %p1433_p10 = pnand %p1431_p6, %p1417_p11  ;;  %p1439_p0 = scmp.lt.s32.totalorder %s1437_s19, %s1430_s12 }
  0x20   : > { %p1434_p12 = pneg %p1433_p10  ;;  %p1440_p1 = por %p1439_p0, %p1438_p9 }
  0x22   : > { %p1441_p2 = pnand %p1440_p1, %p1434_p12 }
  0x24   : > { %1444 = shalt.err (!%p1441_p2)
}
  0x25   : > { %s1482_s20 = smov 128   ;;  %s1483_s23 = smov 8  }
  0x26   : > { %1123 = dma.hbm_to_vmem [thread:$0]  (!%p1555_p8), %s1551_s28, 8192, %s1553_s30, %s1560_s5, %s1482_s20, %s1482_s20, %s1483_s23  }
  0x27   : > { %p154_p11 = scmp.lt.s32.totalorder %s1479_s17, 5  ;;  %p1954_p13 = scmp.ge.s32.totalorder %s1479_s17, 1 }
  0x29   : > { %p155_p3 = pnand %p1954_p13, %p154_p11 }
  0x2a   : > { %s160_s24 = sand.u32 (!%p155_p3), 1, %s1471_s15  }
  0x2b   : > { %158 = sbr.rel (%p155_p3) target bundleno = 352 (0x160), region = 32  ;;  %s1047_s25 = sshll.u32 (!%p155_p3), %s160_s24, 9 }
  0x2c   : > { %s161_s26 = scalar_lea.sflag (!%p155_p3), [#allocation4], %s160_s24  ;;  %s1592_s27 = scalar_lea.vmem (!%p155_p3), [#allocation3], %s1047_s25 }
  0x32   : > { %1462 = dma.done.wait (%p1542_p7), %s161_s26, 8192  }
  0x33   : > { %1464 = vsyncadd (%p1542_p7), %s161_s26, 4294959104  ;;  %v196_v0 = vld [vmem:[%s1592_s27 + $0x10] sm:$0xff]  ;;  %v1602_v1 = vld [vmem:[%s1949_s1] ss:$0 sm:$0xff]  ;;  %s457_s22 = sld [smem:[#allocation2]]  ;;  %s1048_s30 = sshll.u32 %s1039_s2, 6 }
  0x34   : > { %v194_v2 = vld [vmem:[%s1592_s27] sm:$0xff]  ;;  %v267_v3 = vmul.f32 %v1602_v1, %v196_v0  ;;  %v197_v5 = vld [vmem:[%s1592_s27 + $0x18] sm:$0xff]  ;;  %v195_v6 = vld [vmem:[%s1592_s27 + $0x8] sm:$0xff]  ;;  %p189_p7 = scmp.lt.s32.totalorder %s1048_s30, 255  ;;  %vm907_vm0 = vcmask 7168  }
  0x35   : > { %v265_v4 = vmul.f32 %v1602_v1, %v194_v2  ;;  %v268_v7 = vmul.f32 %v1602_v1, %v197_v5  ;;  %v266_v8 = vmul.f32 %v1602_v1, %v195_v6  ;;  %v199_v9 = vld [vmem:[%s1592_s27 + $0x28] sm:$0xff]  ;;  %v198_v10 = vld [vmem:[%s1592_s27 + $0x20] sm:$0xff]  ;;  %v201_v13 = vld [vmem:[%s1592_s27 + $0x38] sm:$0xff] }
  0x36   : > { %333 = vadd.xlane.f32.xlu1 %v267_v3  ;;  %v270_v11 = vmul.f32 %v1602_v1, %v199_v9  ;;  %v269_v12 = vmul.f32 %v1602_v1, %v198_v10  ;;  %v200_v14 = vld [vmem:[%s1592_s27 + $0x30] sm:$0xff]  ;;  %v272_v15 = vmul.f32 %v1602_v1, %v201_v13  ;;  %v203_v17 = vld [vmem:[%s1592_s27 + $0x48] sm:$0xff]  ;;  %v202_v18 = vld [vmem:[%s1592_s27 + $0x40] sm:$0xff]  ;;  %s1960_s30 = smov (!%p189_p7, %s1048_s30), 255 }
  0x37   : > { %329 = vadd.xlane.f32.xlu0 %v265_v4  ;;  %v271_v16 = vmul.f32 %v1602_v1, %v200_v14  ;;  %v274_v19 = vmul.f32 %v1602_v1, %v203_v17  ;;  %v273_v20 = vmul.f32 %v1602_v1, %v202_v18  ;;  %v205_v21 = vld [vmem:[%s1592_s27 + $0x58] sm:$0xff]  ;;  %v204_v22 = vld [vmem:[%s1592_s27 + $0x50] sm:$0xff]  ;;  %v207_v25 = vld [vmem:[%s1592_s27 + $0x68] sm:$0xff]  ;;  %s1049_s17 = sshll.u32 %s1960_s30, 3 }
  0x38   : > { %v276_v23 = vmul.f32 %v1602_v1, %v205_v21  ;;  %v275_v24 = vmul.f32 %v1602_v1, %v204_v22  ;;  %v206_v26 = vld [vmem:[%s1592_s27 + $0x60] sm:$0xff]  ;;  %v278_v27 = vmul.f32 %v1602_v1, %v207_v25  ;;  %v209_v29 = vld [vmem:[%s1592_s27 + $0x78] sm:$0xff]  ;;  %v208_v30 = vld [vmem:[%s1592_s27 + $0x70] sm:$0xff]  ;;  %s1755_s5 = scalar_lea.vmem %s1951_s3, %s1049_s17 }
  0x39   : > { %v277_v28 = vmul.f32 %v1602_v1, %v206_v26  ;;  %v280_v31 = vmul.f32 %v1602_v1, %v209_v29  ;;  %v279_v32 = vmul.f32 %v1602_v1, %v208_v30  ;;  %v211_v33 = vld [vmem:[%s1592_s27 + $0x88] sm:$0xff]  ;;  %v210_v34 = vld [vmem:[%s1592_s27 + $0x80] sm:$0xff]  ;;  %v213_v37 = vld [vmem:[%s1592_s27 + $0x98] sm:$0xff] }
  0x3a   : > { %335 = vadd.xlane.f32.xlu1 %v268_v7  ;;  %v282_v35 = vmul.f32 %v1602_v1, %v211_v33  ;;  %v281_v36 = vmul.f32 %v1602_v1, %v210_v34  ;;  %v212_v38 = vld [vmem:[%s1592_s27 + $0x90] sm:$0xff]  ;;  %v284_v39 = vmul.f32 %v1602_v1, %v213_v37  ;;  %v215_v41 = vld [vmem:[%s1592_s27 + $0xa8] sm:$0xff]  ;;  %v214_v42 = vld [vmem:[%s1592_s27 + $0xa0] sm:$0xff] }
  0x3b   : > { %331 = vadd.xlane.f32.xlu0 %v266_v8  ;;  %v283_v40 = vmul.f32 %v1602_v1, %v212_v38  ;;  %v286_v43 = vmul.f32 %v1602_v1, %v215_v41  ;;  %v285_v44 = vmul.f32 %v1602_v1, %v214_v42  ;;  %v217_v45 = vld [vmem:[%s1592_s27 + $0xb8] sm:$0xff]  ;;  %v216_v46 = vld [vmem:[%s1592_s27 + $0xb0] sm:$0xff]  ;;  %v219_v49 = vld [vmem:[%s1592_s27 + $0xc8] sm:$0xff] }
  0x3c   : > { %v288_v47 = vmul.f32 %v1602_v1, %v217_v45  ;;  %v287_v48 = vmul.f32 %v1602_v1, %v216_v46  ;;  %v218_v50 = vld [vmem:[%s1592_s27 + $0xc0] sm:$0xff]  ;;  %v290_v51 = vmul.f32 %v1602_v1, %v219_v49  ;;  %v221_v53 = vld [vmem:[%s1592_s27 + $0xd8] sm:$0xff]  ;;  %v220_v54 = vld [vmem:[%s1592_s27 + $0xd0] sm:$0xff] }
  0x3d   : > { %v289_v52 = vmul.f32 %v1602_v1, %v218_v50  ;;  %v292_v55 = vmul.f32 %v1602_v1, %v221_v53  ;;  %v291_v56 = vmul.f32 %v1602_v1, %v220_v54  ;;  %v223_v57 = vld [vmem:[%s1592_s27 + $0xe8] sm:$0xff]  ;;  %v222_v58 = vld [vmem:[%s1592_s27 + $0xe0] sm:$0xff]  ;;  %v225_v61 = vld [vmem:[%s1592_s27 + $0xf8] sm:$0xff] }
  0x3e   : > { %339 = vadd.xlane.f32.xlu1 %v270_v11  ;;  %v294_v59 = vmul.f32 %v1602_v1, %v223_v57  ;;  %v293_v60 = vmul.f32 %v1602_v1, %v222_v58  ;;  %v224_v62 = vld [vmem:[%s1592_s27 + $0xf0] sm:$0xff]  ;;  %v296_v63 = vmul.f32 %v1602_v1, %v225_v61  ;;  %v227_v2 = vld [vmem:[%s1592_s27 + $0x108] sm:$0xff]  ;;  %v226_v3 = vld [vmem:[%s1592_s27 + $0x100] sm:$0xff] }
  0x3f   : > { %337 = vadd.xlane.f32.xlu0 %v269_v12  ;;  %v295_v0 = vmul.f32 %v1602_v1, %v224_v62  ;;  %v298_v4 = vmul.f32 %v1602_v1, %v227_v2  ;;  %v297_v5 = vmul.f32 %v1602_v1, %v226_v3  ;;  %v229_v6 = vld [vmem:[%s1592_s27 + $0x118] sm:$0xff]  ;;  %v228_v7 = vld [vmem:[%s1592_s27 + $0x110] sm:$0xff]  ;;  %v231_v10 = vld [vmem:[%s1592_s27 + $0x128] sm:$0xff]  ;;  %v1731_v3 = vstv %s457_s22 }
  0x40   : > { %v300_v8 = vmul.f32 %v1602_v1, %v229_v6  ;;  %v299_v9 = vmul.f32 %v1602_v1, %v228_v7  ;;  %v230_v11 = vld [vmem:[%s1592_s27 + $0x120] sm:$0xff]  ;;  %v302_v12 = vmul.f32 %v1602_v1, %v231_v10  ;;  %v233_v14 = vld [vmem:[%s1592_s27 + $0x138] sm:$0xff]  ;;  %v235_v18 = vld [vmem:[%s1592_s27 + $0x148] sm:$0xff] }
  0x41   : > { %v301_v13 = vmul.f32 %v1602_v1, %v230_v11  ;;  %v237_v22 = vld [vmem:[%s1592_s27 + $0x158] sm:$0xff]  ;;  %v239_v26 = vld [vmem:[%s1592_s27 + $0x168] sm:$0xff] }
  0x42   : > { %343 = vadd.xlane.f32.xlu1 %v272_v15  ;;  %v232_v15 = vld [vmem:[%s1592_s27 + $0x130] sm:$0xff]  ;;  %v241_v30 = vld [vmem:[%s1592_s27 + $0x178] sm:$0xff]  ;;  %v243_v34 = vld [vmem:[%s1592_s27 + $0x188] sm:$0xff] }
  0x43   : > { %341 = vadd.xlane.f32.xlu0 %v271_v16  ;;  %v304_v16 = vmul.f32 %v1602_v1, %v233_v14  ;;  %v303_v17 = vmul.f32 %v1602_v1, %v232_v15  ;;  %v245_v38 = vld [vmem:[%s1592_s27 + $0x198] sm:$0xff]  ;;  %v247_v42 = vld [vmem:[%s1592_s27 + $0x1a8] sm:$0xff] }
  0x44   : > { %v249_v46 = vld [vmem:[%s1592_s27 + $0x1b8] sm:$0xff]  ;;  %v251_v50 = vld [vmem:[%s1592_s27 + $0x1c8] sm:$0xff] }
  0x45   : > { %v253_v54 = vld [vmem:[%s1592_s27 + $0x1d8] sm:$0xff]  ;;  %v255_v58 = vld [vmem:[%s1592_s27 + $0x1e8] sm:$0xff] }
  0x46   : > { %347 = vadd.xlane.f32.xlu1 %v274_v19  ;;  %v234_v19 = vld [vmem:[%s1592_s27 + $0x140] sm:$0xff]  ;;  %v257_v62 = vld [vmem:[%s1592_s27 + $0x1f8] sm:$0xff] }
  0x47   : > { %345 = vadd.xlane.f32.xlu0 %v273_v20  ;;  %v306_v20 = vmul.f32 %v1602_v1, %v235_v18  ;;  %v305_v21 = vmul.f32 %v1602_v1, %v234_v19 }
  0x4a   : > { %351 = vadd.xlane.f32.xlu1 %v276_v23  ;;  %v236_v23 = vld [vmem:[%s1592_s27 + $0x150] sm:$0xff] }
  0x4b   : > { %349 = vadd.xlane.f32.xlu0 %v275_v24  ;;  %v308_v24 = vmul.f32 %v1602_v1, %v237_v22  ;;  %v307_v25 = vmul.f32 %v1602_v1, %v236_v23 }
  0x4e   : > { %355 = vadd.xlane.f32.xlu1 %v278_v27  ;;  %v238_v27 = vld [vmem:[%s1592_s27 + $0x160] sm:$0xff] }
  0x4f   : > { %353 = vadd.xlane.f32.xlu0 %v277_v28  ;;  %v310_v28 = vmul.f32 %v1602_v1, %v239_v26  ;;  %v309_v29 = vmul.f32 %v1602_v1, %v238_v27 }
  0x52   : > { %359 = vadd.xlane.f32.xlu1 %v280_v31  ;;  %v240_v31 = vld [vmem:[%s1592_s27 + $0x170] sm:$0xff] }
  0x53   : > { %357 = vadd.xlane.f32.xlu0 %v279_v32  ;;  %v312_v32 = vmul.f32 %v1602_v1, %v241_v30  ;;  %v311_v33 = vmul.f32 %v1602_v1, %v240_v31 }
  0x56   : > { %363 = vadd.xlane.f32.xlu1 %v282_v35  ;;  %v242_v35 = vld [vmem:[%s1592_s27 + $0x180] sm:$0xff] }
  0x57   : > { %361 = vadd.xlane.f32.xlu0 %v281_v36  ;;  %v314_v36 = vmul.f32 %v1602_v1, %v243_v34  ;;  %v313_v37 = vmul.f32 %v1602_v1, %v242_v35 }
  0x5a   : > { %367 = vadd.xlane.f32.xlu1 %v284_v39  ;;  %v244_v39 = vld [vmem:[%s1592_s27 + $0x190] sm:$0xff] }
  0x5b   : > { %365 = vadd.xlane.f32.xlu0 %v283_v40  ;;  %v316_v40 = vmul.f32 %v1602_v1, %v245_v38  ;;  %v315_v41 = vmul.f32 %v1602_v1, %v244_v39 }
  0x5e   : > { %371 = vadd.xlane.f32.xlu1 %v286_v43  ;;  %v246_v43 = vld [vmem:[%s1592_s27 + $0x1a0] sm:$0xff] }
  0x5f   : > { %369 = vadd.xlane.f32.xlu0 %v285_v44  ;;  %v318_v44 = vmul.f32 %v1602_v1, %v247_v42  ;;  %v317_v45 = vmul.f32 %v1602_v1, %v246_v43 }
  0x62   : > { %375 = vadd.xlane.f32.xlu1 %v288_v47  ;;  %v248_v47 = vld [vmem:[%s1592_s27 + $0x1b0] sm:$0xff] }
  0x63   : > { %373 = vadd.xlane.f32.xlu0 %v287_v48  ;;  %v320_v48 = vmul.f32 %v1602_v1, %v249_v46  ;;  %v319_v49 = vmul.f32 %v1602_v1, %v248_v47 }
  0x66   : > { %379 = vadd.xlane.f32.xlu1 %v290_v51  ;;  %v250_v51 = vld [vmem:[%s1592_s27 + $0x1c0] sm:$0xff] }
  0x67   : > { %377 = vadd.xlane.f32.xlu0 %v289_v52  ;;  %v322_v52 = vmul.f32 %v1602_v1, %v251_v50  ;;  %v321_v53 = vmul.f32 %v1602_v1, %v250_v51 }
  0x6a   : > { %383 = vadd.xlane.f32.xlu1 %v292_v55  ;;  %v252_v55 = vld [vmem:[%s1592_s27 + $0x1d0] sm:$0xff] }
  0x6b   : > { %381 = vadd.xlane.f32.xlu0 %v291_v56  ;;  %v324_v56 = vmul.f32 %v1602_v1, %v253_v54  ;;  %v323_v57 = vmul.f32 %v1602_v1, %v252_v55 }
  0x6e   : > { %387 = vadd.xlane.f32.xlu1 %v294_v59  ;;  %v254_v59 = vld [vmem:[%s1592_s27 + $0x1e0] sm:$0xff] }
  0x6f   : > { %385 = vadd.xlane.f32.xlu0 %v293_v60  ;;  %v326_v60 = vmul.f32 %v1602_v1, %v255_v58  ;;  %v325_v61 = vmul.f32 %v1602_v1, %v254_v59 }
  0x72   : > { %391 = vadd.xlane.f32.xlu1 %v296_v63  ;;  %v256_v63 = vld [vmem:[%s1592_s27 + $0x1f0] sm:$0xff] }
  0x73   : > { %389 = vadd.xlane.f32.xlu0 %v295_v0  ;;  %v328_v0 = vmul.f32 %v1602_v1, %v257_v62  ;;  %v327_v2 = vmul.f32 %v1602_v1, %v256_v63 }
  0x76   : > { %395 = vadd.xlane.f32.xlu1 %v298_v4 }
  0x77   : > { %393 = vadd.xlane.f32.xlu0 %v297_v5 }
  0x7a   : > { %399 = vadd.xlane.f32.xlu1 %v300_v8 }
  0x7b   : > { %397 = vadd.xlane.f32.xlu0 %v299_v9 }
  0x7e   : > { %403 = vadd.xlane.f32.xlu1 %v302_v12 }
  0x7f   : > { %401 = vadd.xlane.f32.xlu0 %v301_v13 }
  0x82   : > { %407 = vadd.xlane.f32.xlu1 %v304_v16 }
  0x83   : > { %405 = vadd.xlane.f32.xlu0 %v303_v17 }
  0x86   : > { %411 = vadd.xlane.f32.xlu1 %v306_v20 }
  0x87   : > { %409 = vadd.xlane.f32.xlu0 %v305_v21 }
  0x8a   : > { %415 = vadd.xlane.f32.xlu1 %v308_v24 }
  0x8b   : > { %413 = vadd.xlane.f32.xlu0 %v307_v25 }
  0x8e   : > { %419 = vadd.xlane.f32.xlu1 %v310_v28 }
  0x8f   : > { %417 = vadd.xlane.f32.xlu0 %v309_v29 }
  0x92   : > { %423 = vadd.xlane.f32.xlu1 %v312_v32 }
  0x93   : > { %421 = vadd.xlane.f32.xlu0 %v311_v33 }
  0x96   : > { %427 = vadd.xlane.f32.xlu1 %v314_v36 }
  0x97   : > { %425 = vadd.xlane.f32.xlu0 %v313_v37 }
  0x9a   : > { %431 = vadd.xlane.f32.xlu1 %v316_v40 }
  0x9b   : > { %429 = vadd.xlane.f32.xlu0 %v315_v41 }
  0x9e   : > { %435 = vadd.xlane.f32.xlu1 %v318_v44 }
  0x9f   : > { %433 = vadd.xlane.f32.xlu0 %v317_v45 }
  0xa2   : > { %439 = vadd.xlane.f32.xlu1 %v320_v48 }
  0xa3   : > { %437 = vadd.xlane.f32.xlu0 %v319_v49 }
  0xa6   : > { %443 = vadd.xlane.f32.xlu1 %v322_v52 }
  0xa7   : > { %441 = vadd.xlane.f32.xlu0 %v321_v53 }
  0xaa   : > { %447 = vadd.xlane.f32.xlu1 %v324_v56 }
  0xab   : > { %445 = vadd.xlane.f32.xlu0 %v323_v57 }
  0xae   : > { %451 = vadd.xlane.f32.xlu1 %v326_v60 }
  0xaf   : > { %449 = vadd.xlane.f32.xlu0 %v325_v61 }
  0xb2   : > { %455 = vadd.xlane.f32.xlu1 %v328_v0 }
  0xb3   : > { %453 = vadd.xlane.f32.xlu0 %v327_v2 }
  0xc3   : > { %v334_v4 = vpop.xlane.xlu1 %333 }
  0xc4   : > { %v330_v5 = vpop.xlane.xlu0 %329  ;;  %v461_v6 = vadd.f32 %v1731_v3, %v334_v4 }
  0xc5   : > { %v459_v7 = vadd.f32 %v1731_v3, %v330_v5 }
  0xc6   : > { %v1053_v8 = vmul.f32 -1.442695, %v461_v6 }
  0xc7   : > { %v1051_v9 = vmul.f32 -1.442695, %v459_v7  ;;  %v336_v10 = vpop.xlane.xlu1 %335 }
  0xc8   : > { %v332_v11 = vpop.xlane.xlu0 %331  ;;  %1159 = vpow2.f32 %v1053_v8  ;;  %v462_v12 = vadd.f32 %v1731_v3, %v336_v10 }
  0xc9   : > { %v460_v1 = vadd.f32 %v1731_v3, %v332_v11  ;;  %1161 = vpow2.f32 %v1051_v9 }
  0xca   : > { %v1054_v13 = vmul.f32 -1.442695, %v462_v12 }
  0xcb   : > { %v1052_v14 = vmul.f32 -1.442695, %v460_v1  ;;  %v340_v15 = vpop.xlane.xlu1 %339 }
  0xcc   : > { %v338_v16 = vpop.xlane.xlu0 %337  ;;  %1163 = vpow2.f32 %v1054_v13  ;;  %v464_v17 = vadd.f32 %v1731_v3, %v340_v15 }
  0xcd   : > { %v463_v18 = vadd.f32 %v1731_v3, %v338_v16  ;;  %1165 = vpow2.f32 %v1052_v14 }
  0xce   : > { %v1056_v19 = vmul.f32 -1.442695, %v464_v17 }
  0xcf   : > { %v1055_v20 = vmul.f32 -1.442695, %v463_v18  ;;  %v344_v21 = vpop.xlane.xlu1 %343 }
  0xd0   : > { %v342_v22 = vpop.xlane.xlu0 %341  ;;  %1167 = vpow2.f32 %v1056_v19  ;;  %v466_v23 = vadd.f32 %v1731_v3, %v344_v21 }
  0xd1   : > { %v465_v24 = vadd.f32 %v1731_v3, %v342_v22  ;;  %1169 = vpow2.f32 %v1055_v20 }
  0xd2   : > { %v1160_v25 = vpop.eup %1159  ;;  %v1058_v26 = vmul.f32 -1.442695, %v466_v23 }
  0xd3   : > { %v1162_v27 = vpop.eup %1161  ;;  %v717_v28 = vadd.f32 1.0, %v1160_v25  ;;  %v1057_v29 = vmul.f32 -1.442695, %v465_v24  ;;  %v348_v30 = vpop.xlane.xlu1 %347 }
  0xd4   : > { %v346_v31 = vpop.xlane.xlu0 %345  ;;  %v715_v32 = vadd.f32 1.0, %v1162_v27  ;;  %1171 = vpow2.f32 %v1058_v26  ;;  %v468_v33 = vadd.f32 %v1731_v3, %v348_v30 }
  0xd5   : > { %v467_v34 = vadd.f32 %v1731_v3, %v346_v31  ;;  %1173 = vrcp.f32 %v717_v28 }
  0xd6   : > { %v1164_v35 = vpop.eup %1163  ;;  %1175 = vrcp.f32 %v715_v32  ;;  %v1060_v36 = vmul.f32 -1.442695, %v468_v33 }
  0xd7   : > { %v1166_v37 = vpop.eup %1165  ;;  %v718_v38 = vadd.f32 1.0, %v1164_v35  ;;  %1177 = vpow2.f32 %v1057_v29  ;;  %v1059_v39 = vmul.f32 -1.442695, %v467_v34  ;;  %v352_v40 = vpop.xlane.xlu1 %351 }
  0xd8   : > { %v350_v41 = vpop.xlane.xlu0 %349  ;;  %v716_v42 = vadd.f32 1.0, %v1166_v37  ;;  %1179 = vpow2.f32 %v1060_v36  ;;  %v470_v43 = vadd.f32 %v1731_v3, %v352_v40 }
  0xd9   : > { %v469_v44 = vadd.f32 %v1731_v3, %v350_v41  ;;  %1181 = vrcp.f32 %v718_v38 }
  0xda   : > { %v1168_v45 = vpop.eup %1167  ;;  %1183 = vrcp.f32 %v716_v42  ;;  %v1062_v46 = vmul.f32 -1.442695, %v470_v43 }
  0xdb   : > { %v1170_v47 = vpop.eup %1169  ;;  %v720_v48 = vadd.f32 1.0, %v1168_v45  ;;  %1185 = vpow2.f32 %v1059_v39  ;;  %v1061_v49 = vmul.f32 -1.442695, %v469_v44  ;;  %v356_v50 = vpop.xlane.xlu1 %355 }
  0xdc   : > { %v354_v51 = vpop.xlane.xlu0 %353  ;;  %v719_v52 = vadd.f32 1.0, %v1170_v47  ;;  %1187 = vpow2.f32 %v1062_v46  ;;  %v472_v53 = vadd.f32 %v1731_v3, %v356_v50 }
  0xdd   : > { %v471_v54 = vadd.f32 %v1731_v3, %v354_v51  ;;  %1189 = vrcp.f32 %v720_v48 }
  0xde   : > { %v1172_v55 = vpop.eup %1171  ;;  %1191 = vrcp.f32 %v719_v52  ;;  %v1064_v56 = vmul.f32 -1.442695, %v472_v53 }
  0xdf   : > { %v1063_v57 = vmul.f32 -1.442695, %v471_v54  ;;  %v1174_v58 = vpop.eup %1173  ;;  %v722_v59 = vadd.f32 1.0, %v1172_v55  ;;  %1193 = vpow2.f32 %v1061_v49  ;;  %v360_v60 = vpop.xlane.xlu1 %359 }
  0xe0   : > { %v358_v61 = vpop.xlane.xlu0 %357  ;;  %v1176_v62 = vpop.eup %1175  ;;  %910 = vst.msk [vmem:[%s1755_s5 + $0x10] sm:$0xff] %vm907_vm0, %v1174_v58  ;;  %1195 = vpow2.f32 %v1064_v56  ;;  %v474_v63 = vadd.f32 %v1731_v3, %v360_v60 }
  0xe1   : > { %v473_v0 = vadd.f32 %v1731_v3, %v358_v61  ;;  %v1178_v2 = vpop.eup %1177  ;;  %908 = vst.msk [vmem:[%s1755_s5] sm:$0xff] %vm907_vm0, %v1176_v62  ;;  %1197 = vrcp.f32 %v722_v59 }
  0xe2   : > { %v1180_v4 = vpop.eup %1179  ;;  %v721_v5 = vadd.f32 1.0, %v1178_v2  ;;  %1199 = vpow2.f32 %v1063_v57  ;;  %v1066_v6 = vmul.f32 -1.442695, %v474_v63 }
  0xe3   : > { %v1182_v7 = vpop.eup %1181  ;;  %v724_v8 = vadd.f32 1.0, %v1180_v4  ;;  %v1065_v9 = vmul.f32 -1.442695, %v473_v0  ;;  %v364_v10 = vpop.xlane.xlu1 %363 }
  0xe4   : > { %v362_v11 = vpop.xlane.xlu0 %361  ;;  %v1184_v12 = vpop.eup %1183  ;;  %911 = vst.msk [vmem:[%s1755_s5 + $0x18] sm:$0xff] %vm907_vm0, %v1182_v7  ;;  %1201 = vrcp.f32 %v721_v5  ;;  %v476_v1 = vadd.f32 %v1731_v3, %v364_v10 }
  0xe5   : > { %v475_v13 = vadd.f32 %v1731_v3, %v362_v11  ;;  %v1186_v14 = vpop.eup %1185  ;;  %909 = vst.msk [vmem:[%s1755_s5 + $0x8] sm:$0xff] %vm907_vm0, %v1184_v12  ;;  %1203 = vrcp.f32 %v724_v8 }
  0xe6   : > { %v1188_v15 = vpop.eup %1187  ;;  %v723_v16 = vadd.f32 1.0, %v1186_v14  ;;  %1205 = vpow2.f32 %v1066_v6  ;;  %v1068_v17 = vmul.f32 -1.442695, %v476_v1 }
  0xe7   : > { %v1190_v18 = vpop.eup %1189  ;;  %v726_v19 = vadd.f32 1.0, %v1188_v15  ;;  %1207 = vpow2.f32 %v1065_v9  ;;  %v1067_v20 = vmul.f32 -1.442695, %v475_v13  ;;  %v368_v21 = vpop.xlane.xlu1 %367 }
  0xe8   : > { %v366_v22 = vpop.xlane.xlu0 %365  ;;  %v1192_v23 = vpop.eup %1191  ;;  %913 = vst.msk [vmem:[%s1755_s5 + $0x28] sm:$0xff] %vm907_vm0, %v1190_v18  ;;  %1209 = vrcp.f32 %v723_v16  ;;  %v478_v24 = vadd.f32 %v1731_v3, %v368_v21 }
  0xe9   : > { %v477_v25 = vadd.f32 %v1731_v3, %v366_v22  ;;  %v1194_v26 = vpop.eup %1193  ;;  %912 = vst.msk [vmem:[%s1755_s5 + $0x20] sm:$0xff] %vm907_vm0, %v1192_v23  ;;  %1211 = vrcp.f32 %v726_v19 }
  0xea   : > { %v1196_v27 = vpop.eup %1195  ;;  %v725_v28 = vadd.f32 1.0, %v1194_v26  ;;  %1213 = vpow2.f32 %v1068_v17  ;;  %v1070_v29 = vmul.f32 -1.442695, %v478_v24 }
  0xeb   : > { %v1198_v30 = vpop.eup %1197  ;;  %v728_v31 = vadd.f32 1.0, %v1196_v27  ;;  %1215 = vpow2.f32 %v1067_v20  ;;  %v372_v32 = vpop.xlane.xlu1 %371  ;;  %v1069_v35 = vmul.f32 -1.442695, %v477_v25 }
  0xec   : > { %v370_v33 = vpop.xlane.xlu0 %369  ;;  %v1200_v34 = vpop.eup %1199  ;;  %915 = vst.msk [vmem:[%s1755_s5 + $0x38] sm:$0xff] %vm907_vm0, %v1198_v30  ;;  %1217 = vrcp.f32 %v725_v28  ;;  %v480_v36 = vadd.f32 %v1731_v3, %v372_v32 }
  0xed   : > { %v479_v37 = vadd.f32 %v1731_v3, %v370_v33  ;;  %1219 = vrcp.f32 %v728_v31  ;;  %v727_v38 = vadd.f32 1.0, %v1200_v34 }
  0xee   : > { %v1202_v39 = vpop.eup %1201  ;;  %1221 = vpow2.f32 %v1070_v29  ;;  %v1072_v40 = vmul.f32 -1.442695, %v480_v36 }
  0xef   : > { %v1071_v41 = vmul.f32 -1.442695, %v479_v37  ;;  %v1204_v42 = vpop.eup %1203  ;;  %914 = vst.msk [vmem:[%s1755_s5 + $0x30] sm:$0xff] %vm907_vm0, %v1202_v39  ;;  %1223 = vrcp.f32 %v727_v38  ;;  %v376_v43 = vpop.xlane.xlu1 %375 }
  0xf0   : > { %v374_v44 = vpop.xlane.xlu0 %373  ;;  %v1206_v45 = vpop.eup %1205  ;;  %917 = vst.msk [vmem:[%s1755_s5 + $0x48] sm:$0xff] %vm907_vm0, %v1204_v42  ;;  %1225 = vpow2.f32 %v1069_v35  ;;  %v482_v46 = vadd.f32 %v1731_v3, %v376_v43 }
  0xf1   : > { %v481_v47 = vadd.f32 %v1731_v3, %v374_v44  ;;  %v1208_v48 = vpop.eup %1207  ;;  %v730_v49 = vadd.f32 1.0, %v1206_v45  ;;  %1227 = vpow2.f32 %v1072_v40 }
  0xf2   : > { %v1210_v50 = vpop.eup %1209  ;;  %v729_v51 = vadd.f32 1.0, %v1208_v48  ;;  %1229 = vpow2.f32 %v1071_v41  ;;  %v1074_v52 = vmul.f32 -1.442695, %v482_v46 }
  0xf3   : > { %v1073_v53 = vmul.f32 -1.442695, %v481_v47  ;;  %v1212_v54 = vpop.eup %1211  ;;  %916 = vst.msk [vmem:[%s1755_s5 + $0x40] sm:$0xff] %vm907_vm0, %v1210_v50  ;;  %1231 = vrcp.f32 %v730_v49  ;;  %v380_v55 = vpop.xlane.xlu1 %379 }
  0xf4   : > { %v378_v56 = vpop.xlane.xlu0 %377  ;;  %v1214_v57 = vpop.eup %1213  ;;  %919 = vst.msk [vmem:[%s1755_s5 + $0x58] sm:$0xff] %vm907_vm0, %v1212_v54  ;;  %1233 = vrcp.f32 %v729_v51  ;;  %v484_v58 = vadd.f32 %v1731_v3, %v380_v55 }
  0xf5   : > { %v483_v59 = vadd.f32 %v1731_v3, %v378_v56  ;;  %v1216_v60 = vpop.eup %1215  ;;  %v732_v61 = vadd.f32 1.0, %v1214_v57  ;;  %1235 = vpow2.f32 %v1074_v52 }
  0xf6   : > { %v1218_v62 = vpop.eup %1217  ;;  %v731_v63 = vadd.f32 1.0, %v1216_v60  ;;  %1237 = vpow2.f32 %v1073_v53  ;;  %v1076_v0 = vmul.f32 -1.442695, %v484_v58 }
  0xf7   : > { %v1075_v2 = vmul.f32 -1.442695, %v483_v59  ;;  %v1220_v4 = vpop.eup %1219  ;;  %918 = vst.msk [vmem:[%s1755_s5 + $0x50] sm:$0xff] %vm907_vm0, %v1218_v62  ;;  %1239 = vrcp.f32 %v732_v61  ;;  %v384_v5 = vpop.xlane.xlu1 %383 }
  0xf8   : > { %v382_v6 = vpop.xlane.xlu0 %381  ;;  %v1222_v7 = vpop.eup %1221  ;;  %921 = vst.msk [vmem:[%s1755_s5 + $0x68] sm:$0xff] %vm907_vm0, %v1220_v4  ;;  %1241 = vrcp.f32 %v731_v63  ;;  %v486_v8 = vadd.f32 %v1731_v3, %v384_v5 }
  0xf9   : > { %v485_v9 = vadd.f32 %v1731_v3, %v382_v6  ;;  %v1224_v10 = vpop.eup %1223  ;;  %v734_v11 = vadd.f32 1.0, %v1222_v7  ;;  %1243 = vpow2.f32 %v1076_v0 }
  0xfa   : > { %v1226_v12 = vpop.eup %1225  ;;  %920 = vst.msk [vmem:[%s1755_s5 + $0x60] sm:$0xff] %vm907_vm0, %v1224_v10  ;;  %1245 = vpow2.f32 %v1075_v2  ;;  %v1078_v1 = vmul.f32 -1.442695, %v486_v8 }
  0xfb   : > { %v1228_v13 = vpop.eup %1227  ;;  %1247 = vrcp.f32 %v734_v11  ;;  %v733_v14 = vadd.f32 1.0, %v1226_v12  ;;  %v1077_v15 = vmul.f32 -1.442695, %v485_v9  ;;  %v388_v16 = vpop.xlane.xlu1 %387 }
  0xfc   : > { %v386_v17 = vpop.xlane.xlu0 %385  ;;  %v1230_v18 = vpop.eup %1229  ;;  %v736_v19 = vadd.f32 1.0, %v1228_v13  ;;  %1249 = vpow2.f32 %v1078_v1  ;;  %v488_v20 = vadd.f32 %v1731_v3, %v388_v16 }
  0xfd   : > { %v487_v21 = vadd.f32 %v1731_v3, %v386_v17  ;;  %v1232_v22 = vpop.eup %1231  ;;  %1251 = vrcp.f32 %v733_v14  ;;  %v735_v23 = vadd.f32 1.0, %v1230_v18 }
  0xfe   : > { %v1234_v24 = vpop.eup %1233  ;;  %923 = vst.msk [vmem:[%s1755_s5 + $0x78] sm:$0xff] %vm907_vm0, %v1232_v22  ;;  %1253 = vrcp.f32 %v736_v19  ;;  %v1080_v25 = vmul.f32 -1.442695, %v488_v20 }
  0xff   : > { %v1236_v26 = vpop.eup %1235  ;;  %922 = vst.msk [vmem:[%s1755_s5 + $0x70] sm:$0xff] %vm907_vm0, %v1234_v24  ;;  %1255 = vrcp.f32 %v735_v23  ;;  %v1079_v27 = vmul.f32 -1.442695, %v487_v21  ;;  %v392_v28 = vpop.xlane.xlu1 %391 }
 0x100   : > { %v390_v29 = vpop.xlane.xlu0 %389  ;;  %v1238_v30 = vpop.eup %1237  ;;  %v738_v31 = vadd.f32 1.0, %v1236_v26  ;;  %1257 = vpow2.f32 %v1077_v15  ;;  %v490_v32 = vadd.f32 %v1731_v3, %v392_v28 }
 0x101   : > { %v489_v33 = vadd.f32 %v1731_v3, %v390_v29  ;;  %v1240_v34 = vpop.eup %1239  ;;  %v737_v35 = vadd.f32 1.0, %v1238_v30  ;;  %1259 = vpow2.f32 %v1080_v25 }
 0x102   : > { %v1242_v36 = vpop.eup %1241  ;;  %925 = vst.msk [vmem:[%s1755_s5 + $0x88] sm:$0xff] %vm907_vm0, %v1240_v34  ;;  %1261 = vrcp.f32 %v738_v31  ;;  %v1082_v37 = vmul.f32 -1.442695, %v490_v32 }
 0x103   : > { %v1244_v38 = vpop.eup %1243  ;;  %924 = vst.msk [vmem:[%s1755_s5 + $0x80] sm:$0xff] %vm907_vm0, %v1242_v36  ;;  %1263 = vrcp.f32 %v737_v35  ;;  %v1081_v39 = vmul.f32 -1.442695, %v489_v33  ;;  %v396_v40 = vpop.xlane.xlu1 %395 }
 0x104   : > { %v394_v41 = vpop.xlane.xlu0 %393  ;;  %v1246_v42 = vpop.eup %1245  ;;  %v740_v43 = vadd.f32 1.0, %v1244_v38  ;;  %1265 = vpow2.f32 %v1079_v27  ;;  %v492_v44 = vadd.f32 %v1731_v3, %v396_v40 }
 0x105   : > { %v491_v45 = vadd.f32 %v1731_v3, %v394_v41  ;;  %v1248_v46 = vpop.eup %1247  ;;  %v739_v47 = vadd.f32 1.0, %v1246_v42  ;;  %1267 = vpow2.f32 %v1082_v37 }
 0x106   : > { %v1250_v48 = vpop.eup %1249  ;;  %927 = vst.msk [vmem:[%s1755_s5 + $0x98] sm:$0xff] %vm907_vm0, %v1248_v46  ;;  %1269 = vrcp.f32 %v740_v43  ;;  %v1084_v49 = vmul.f32 -1.442695, %v492_v44 }
 0x107   : > { %v1252_v50 = vpop.eup %1251  ;;  %1271 = vrcp.f32 %v739_v47  ;;  %v742_v51 = vadd.f32 1.0, %v1250_v48  ;;  %v1083_v52 = vmul.f32 -1.442695, %v491_v45  ;;  %v400_v53 = vpop.xlane.xlu1 %399 }
 0x108   : > { %v398_v54 = vpop.xlane.xlu0 %397  ;;  %v1254_v55 = vpop.eup %1253  ;;  %926 = vst.msk [vmem:[%s1755_s5 + $0x90] sm:$0xff] %vm907_vm0, %v1252_v50  ;;  %1273 = vpow2.f32 %v1081_v39  ;;  %v494_v56 = vadd.f32 %v1731_v3, %v400_v53 }
 0x109   : > { %v493_v57 = vadd.f32 %v1731_v3, %v398_v54  ;;  %v1256_v58 = vpop.eup %1255  ;;  %929 = vst.msk [vmem:[%s1755_s5 + $0xa8] sm:$0xff] %vm907_vm0, %v1254_v55  ;;  %1275 = vrcp.f32 %v742_v51 }
 0x10a   : > { %v1258_v59 = vpop.eup %1257  ;;  %928 = vst.msk [vmem:[%s1755_s5 + $0xa0] sm:$0xff] %vm907_vm0, %v1256_v58  ;;  %1277 = vpow2.f32 %v1084_v49  ;;  %v1086_v60 = vmul.f32 -1.442695, %v494_v56 }
 0x10b   : > { %v1260_v61 = vpop.eup %1259  ;;  %v741_v62 = vadd.f32 1.0, %v1258_v59  ;;  %1279 = vpow2.f32 %v1083_v52  ;;  %v1085_v63 = vmul.f32 -1.442695, %v493_v57  ;;  %v404_v0 = vpop.xlane.xlu1 %403 }
 0x10c   : > { %v402_v2 = vpop.xlane.xlu0 %401  ;;  %v1262_v4 = vpop.eup %1261  ;;  %v744_v5 = vadd.f32 1.0, %v1260_v61  ;;  %1281 = vpow2.f32 %v1086_v60  ;;  %v496_v6 = vadd.f32 %v1731_v3, %v404_v0 }
 0x10d   : > { %v495_v7 = vadd.f32 %v1731_v3, %v402_v2  ;;  %v1264_v8 = vpop.eup %1263  ;;  %931 = vst.msk [vmem:[%s1755_s5 + $0xb8] sm:$0xff] %vm907_vm0, %v1262_v4  ;;  %1283 = vrcp.f32 %v741_v62 }
 0x10e   : > { %v1266_v9 = vpop.eup %1265  ;;  %930 = vst.msk [vmem:[%s1755_s5 + $0xb0] sm:$0xff] %vm907_vm0, %v1264_v8  ;;  %1285 = vrcp.f32 %v744_v5  ;;  %v1088_v10 = vmul.f32 -1.442695, %v496_v6 }
 0x10f   : > { %v1268_v11 = vpop.eup %1267  ;;  %v743_v12 = vadd.f32 1.0, %v1266_v9  ;;  %1287 = vpow2.f32 %v1085_v63  ;;  %v1087_v1 = vmul.f32 -1.442695, %v495_v7  ;;  %v408_v13 = vpop.xlane.xlu1 %407 }
 0x110   : > { %v406_v14 = vpop.xlane.xlu0 %405  ;;  %v1270_v15 = vpop.eup %1269  ;;  %v746_v16 = vadd.f32 1.0, %v1268_v11  ;;  %1289 = vpow2.f32 %v1088_v10  ;;  %v498_v17 = vadd.f32 %v1731_v3, %v408_v13 }
 0x111   : > { %v497_v18 = vadd.f32 %v1731_v3, %v406_v14  ;;  %v1272_v19 = vpop.eup %1271  ;;  %933 = vst.msk [vmem:[%s1755_s5 + $0xc8] sm:$0xff] %vm907_vm0, %v1270_v15  ;;  %1291 = vrcp.f32 %v743_v12 }
 0x112   : > { %v1274_v20 = vpop.eup %1273  ;;  %932 = vst.msk [vmem:[%s1755_s5 + $0xc0] sm:$0xff] %vm907_vm0, %v1272_v19  ;;  %1293 = vrcp.f32 %v746_v16  ;;  %v1090_v21 = vmul.f32 -1.442695, %v498_v17 }
 0x113   : > { %v1089_v22 = vmul.f32 -1.442695, %v497_v18  ;;  %v1276_v23 = vpop.eup %1275  ;;  %v745_v24 = vadd.f32 1.0, %v1274_v20  ;;  %1295 = vpow2.f32 %v1087_v1  ;;  %v412_v25 = vpop.xlane.xlu1 %411 }
 0x114   : > { %v410_v26 = vpop.xlane.xlu0 %409  ;;  %v1278_v27 = vpop.eup %1277  ;;  %935 = vst.msk [vmem:[%s1755_s5 + $0xd8] sm:$0xff] %vm907_vm0, %v1276_v23  ;;  %1297 = vpow2.f32 %v1090_v21  ;;  %v500_v28 = vadd.f32 %v1731_v3, %v412_v25 }
 0x115   : > { %v499_v29 = vadd.f32 %v1731_v3, %v410_v26  ;;  %v1280_v30 = vpop.eup %1279  ;;  %1299 = vrcp.f32 %v745_v24  ;;  %v748_v31 = vadd.f32 1.0, %v1278_v27 }
 0x116   : > { %v1282_v32 = vpop.eup %1281  ;;  %v747_v33 = vadd.f32 1.0, %v1280_v30  ;;  %1301 = vpow2.f32 %v1089_v22  ;;  %v1092_v34 = vmul.f32 -1.442695, %v500_v28 }
 0x117   : > { %v1284_v35 = vpop.eup %1283  ;;  %1303 = vrcp.f32 %v748_v31  ;;  %v750_v36 = vadd.f32 1.0, %v1282_v32  ;;  %v1091_v37 = vmul.f32 -1.442695, %v499_v29  ;;  %v416_v38 = vpop.xlane.xlu1 %415 }
 0x118   : > { %v414_v39 = vpop.xlane.xlu0 %413  ;;  %v1286_v40 = vpop.eup %1285  ;;  %934 = vst.msk [vmem:[%s1755_s5 + $0xd0] sm:$0xff] %vm907_vm0, %v1284_v35  ;;  %1305 = vrcp.f32 %v747_v33  ;;  %v502_v41 = vadd.f32 %v1731_v3, %v416_v38 }
 0x119   : > { %v501_v42 = vadd.f32 %v1731_v3, %v414_v39  ;;  %v1288_v43 = vpop.eup %1287  ;;  %937 = vst.msk [vmem:[%s1755_s5 + $0xe8] sm:$0xff] %vm907_vm0, %v1286_v40  ;;  %1307 = vrcp.f32 %v750_v36 }
 0x11a   : > { %v1290_v44 = vpop.eup %1289  ;;  %v749_v45 = vadd.f32 1.0, %v1288_v43  ;;  %1309 = vpow2.f32 %v1092_v34  ;;  %v1094_v46 = vmul.f32 -1.442695, %v502_v41 }
 0x11b   : > { %v1292_v47 = vpop.eup %1291  ;;  %v752_v48 = vadd.f32 1.0, %v1290_v44  ;;  %1311 = vpow2.f32 %v1091_v37  ;;  %v1093_v49 = vmul.f32 -1.442695, %v501_v42  ;;  %v420_v50 = vpop.xlane.xlu1 %419 }
 0x11c   : > { %v418_v51 = vpop.xlane.xlu0 %417  ;;  %v1294_v52 = vpop.eup %1293  ;;  %936 = vst.msk [vmem:[%s1755_s5 + $0xe0] sm:$0xff] %vm907_vm0, %v1292_v47  ;;  %1313 = vrcp.f32 %v749_v45  ;;  %v504_v53 = vadd.f32 %v1731_v3, %v420_v50 }
 0x11d   : > { %v503_v54 = vadd.f32 %v1731_v3, %v418_v51  ;;  %v1296_v55 = vpop.eup %1295  ;;  %939 = vst.msk [vmem:[%s1755_s5 + $0xf8] sm:$0xff] %vm907_vm0, %v1294_v52  ;;  %1315 = vrcp.f32 %v752_v48 }
 0x11e   : > { %v1298_v56 = vpop.eup %1297  ;;  %v751_v57 = vadd.f32 1.0, %v1296_v55  ;;  %1317 = vpow2.f32 %v1094_v46  ;;  %v1096_v58 = vmul.f32 -1.442695, %v504_v53 }
 0x11f   : > { %v1300_v59 = vpop.eup %1299  ;;  %v754_v60 = vadd.f32 1.0, %v1298_v56  ;;  %1319 = vpow2.f32 %v1093_v49  ;;  %v424_v61 = vpop.xlane.xlu1 %423  ;;  %v1095_v0 = vmul.f32 -1.442695, %v503_v54 }
 0x120   : > { %v422_v62 = vpop.xlane.xlu0 %421  ;;  %v1302_v63 = vpop.eup %1301  ;;  %938 = vst.msk [vmem:[%s1755_s5 + $0xf0] sm:$0xff] %vm907_vm0, %v1300_v59  ;;  %1321 = vrcp.f32 %v751_v57  ;;  %v506_v2 = vadd.f32 %v1731_v3, %v424_v61 }
 0x121   : > { %v505_v4 = vadd.f32 %v1731_v3, %v422_v62  ;;  %v1304_v5 = vpop.eup %1303  ;;  %1323 = vrcp.f32 %v754_v60  ;;  %v753_v6 = vadd.f32 1.0, %v1302_v63 }
 0x122   : > { %v1306_v7 = vpop.eup %1305  ;;  %941 = vst.msk [vmem:[%s1755_s5 + $0x108] sm:$0xff] %vm907_vm0, %v1304_v5  ;;  %1325 = vpow2.f32 %v1096_v58  ;;  %v1098_v8 = vmul.f32 -1.442695, %v506_v2 }
 0x123   : > { %v1097_v9 = vmul.f32 -1.442695, %v505_v4  ;;  %v1308_v10 = vpop.eup %1307  ;;  %940 = vst.msk [vmem:[%s1755_s5 + $0x100] sm:$0xff] %vm907_vm0, %v1306_v7  ;;  %1327 = vrcp.f32 %v753_v6  ;;  %v428_v11 = vpop.xlane.xlu1 %427 }
 0x124   : > { %v426_v12 = vpop.xlane.xlu0 %425  ;;  %v1310_v1 = vpop.eup %1309  ;;  %943 = vst.msk [vmem:[%s1755_s5 + $0x118] sm:$0xff] %vm907_vm0, %v1308_v10  ;;  %1329 = vpow2.f32 %v1095_v0  ;;  %v508_v13 = vadd.f32 %v1731_v3, %v428_v11 }
 0x125   : > { %v507_v14 = vadd.f32 %v1731_v3, %v426_v12  ;;  %v1312_v15 = vpop.eup %1311  ;;  %v756_v16 = vadd.f32 1.0, %v1310_v1  ;;  %1331 = vpow2.f32 %v1098_v8 }
 0x126   : > { %v1314_v17 = vpop.eup %1313  ;;  %v755_v18 = vadd.f32 1.0, %v1312_v15  ;;  %1333 = vpow2.f32 %v1097_v9  ;;  %v1100_v19 = vmul.f32 -1.442695, %v508_v13 }
 0x127   : > { %v1099_v20 = vmul.f32 -1.442695, %v507_v14  ;;  %v1316_v21 = vpop.eup %1315  ;;  %942 = vst.msk [vmem:[%s1755_s5 + $0x110] sm:$0xff] %vm907_vm0, %v1314_v17  ;;  %1335 = vrcp.f32 %v756_v16  ;;  %v432_v22 = vpop.xlane.xlu1 %431 }
 0x128   : > { %v430_v23 = vpop.xlane.xlu0 %429  ;;  %v1318_v24 = vpop.eup %1317  ;;  %945 = vst.msk [vmem:[%s1755_s5 + $0x128] sm:$0xff] %vm907_vm0, %v1316_v21  ;;  %1337 = vrcp.f32 %v755_v18  ;;  %v510_v25 = vadd.f32 %v1731_v3, %v432_v22 }
 0x129   : > { %v509_v26 = vadd.f32 %v1731_v3, %v430_v23  ;;  %v1320_v27 = vpop.eup %1319  ;;  %v758_v28 = vadd.f32 1.0, %v1318_v24  ;;  %1339 = vpow2.f32 %v1100_v19 }
 0x12a   : > { %v1322_v29 = vpop.eup %1321  ;;  %v757_v30 = vadd.f32 1.0, %v1320_v27  ;;  %1341 = vpow2.f32 %v1099_v20  ;;  %v1102_v31 = vmul.f32 -1.442695, %v510_v25 }
 0x12b   : > { %v1101_v32 = vmul.f32 -1.442695, %v509_v26  ;;  %v1324_v33 = vpop.eup %1323  ;;  %944 = vst.msk [vmem:[%s1755_s5 + $0x120] sm:$0xff] %vm907_vm0, %v1322_v29  ;;  %1343 = vrcp.f32 %v758_v28  ;;  %v436_v34 = vpop.xlane.xlu1 %435 }
 0x12c   : > { %v434_v35 = vpop.xlane.xlu0 %433  ;;  %v1326_v36 = vpop.eup %1325  ;;  %947 = vst.msk [vmem:[%s1755_s5 + $0x138] sm:$0xff] %vm907_vm0, %v1324_v33  ;;  %1345 = vrcp.f32 %v757_v30  ;;  %v512_v37 = vadd.f32 %v1731_v3, %v436_v34 }
 0x12d   : > { %v511_v38 = vadd.f32 %v1731_v3, %v434_v35  ;;  %v1328_v39 = vpop.eup %1327  ;;  %v760_v40 = vadd.f32 1.0, %v1326_v36  ;;  %1347 = vpow2.f32 %v1102_v31 }
 0x12e   : > { %v1330_v41 = vpop.eup %1329  ;;  %946 = vst.msk [vmem:[%s1755_s5 + $0x130] sm:$0xff] %vm907_vm0, %v1328_v39  ;;  %1349 = vpow2.f32 %v1101_v32  ;;  %v1104_v42 = vmul.f32 -1.442695, %v512_v37 }
 0x12f   : > { %v1332_v43 = vpop.eup %1331  ;;  %1351 = vrcp.f32 %v760_v40  ;;  %v759_v44 = vadd.f32 1.0, %v1330_v41  ;;  %v1103_v45 = vmul.f32 -1.442695, %v511_v38  ;;  %v440_v46 = vpop.xlane.xlu1 %439 }
 0x130   : > { %v438_v47 = vpop.xlane.xlu0 %437  ;;  %v1334_v48 = vpop.eup %1333  ;;  %v762_v49 = vadd.f32 1.0, %v1332_v43  ;;  %1353 = vpow2.f32 %v1104_v42  ;;  %v514_v50 = vadd.f32 %v1731_v3, %v440_v46 }
 0x131   : > { %v513_v51 = vadd.f32 %v1731_v3, %v438_v47  ;;  %v1336_v52 = vpop.eup %1335  ;;  %1355 = vrcp.f32 %v759_v44  ;;  %v761_v53 = vadd.f32 1.0, %v1334_v48 }
 0x132   : > { %v1338_v54 = vpop.eup %1337  ;;  %949 = vst.msk [vmem:[%s1755_s5 + $0x148] sm:$0xff] %vm907_vm0, %v1336_v52  ;;  %1357 = vrcp.f32 %v762_v49  ;;  %v1106_v55 = vmul.f32 -1.442695, %v514_v50 }
 0x133   : > { %v1340_v56 = vpop.eup %1339  ;;  %948 = vst.msk [vmem:[%s1755_s5 + $0x140] sm:$0xff] %vm907_vm0, %v1338_v54  ;;  %1359 = vrcp.f32 %v761_v53  ;;  %v1105_v57 = vmul.f32 -1.442695, %v513_v51  ;;  %v444_v58 = vpop.xlane.xlu1 %443 }
 0x134   : > { %v442_v59 = vpop.xlane.xlu0 %441  ;;  %v1342_v60 = vpop.eup %1341  ;;  %v764_v61 = vadd.f32 1.0, %v1340_v56  ;;  %1361 = vpow2.f32 %v1103_v45  ;;  %v516_v62 = vadd.f32 %v1731_v3, %v444_v58 }
 0x135   : > { %v515_v63 = vadd.f32 %v1731_v3, %v442_v59  ;;  %v1344_v0 = vpop.eup %1343  ;;  %v763_v2 = vadd.f32 1.0, %v1342_v60  ;;  %1363 = vpow2.f32 %v1106_v55 }
 0x136   : > { %v1346_v4 = vpop.eup %1345  ;;  %951 = vst.msk [vmem:[%s1755_s5 + $0x158] sm:$0xff] %vm907_vm0, %v1344_v0  ;;  %1365 = vrcp.f32 %v764_v61  ;;  %v1108_v5 = vmul.f32 -1.442695, %v516_v62 }
 0x137   : > { %v1348_v6 = vpop.eup %1347  ;;  %950 = vst.msk [vmem:[%s1755_s5 + $0x150] sm:$0xff] %vm907_vm0, %v1346_v4  ;;  %1367 = vrcp.f32 %v763_v2  ;;  %v1107_v7 = vmul.f32 -1.442695, %v515_v63  ;;  %v448_v8 = vpop.xlane.xlu1 %447 }
 0x138   : > { %v446_v9 = vpop.xlane.xlu0 %445  ;;  %v1350_v10 = vpop.eup %1349  ;;  %v766_v11 = vadd.f32 1.0, %v1348_v6  ;;  %1369 = vpow2.f32 %v1105_v57  ;;  %v518_v12 = vadd.f32 %v1731_v3, %v448_v8 }
 0x139   : > { %v517_v1 = vadd.f32 %v1731_v3, %v446_v9  ;;  %v1352_v13 = vpop.eup %1351  ;;  %v765_v14 = vadd.f32 1.0, %v1350_v10  ;;  %1371 = vpow2.f32 %v1108_v5 }
 0x13a   : > { %v1354_v15 = vpop.eup %1353  ;;  %953 = vst.msk [vmem:[%s1755_s5 + $0x168] sm:$0xff] %vm907_vm0, %v1352_v13  ;;  %1373 = vrcp.f32 %v766_v11  ;;  %v1110_v16 = vmul.f32 -1.442695, %v518_v12 }
 0x13b   : > { %v1356_v17 = vpop.eup %1355  ;;  %1375 = vrcp.f32 %v765_v14  ;;  %v768_v18 = vadd.f32 1.0, %v1354_v15  ;;  %v1109_v19 = vmul.f32 -1.442695, %v517_v1  ;;  %v452_v20 = vpop.xlane.xlu1 %451 }
 0x13c   : > { %v450_v21 = vpop.xlane.xlu0 %449  ;;  %v1358_v22 = vpop.eup %1357  ;;  %952 = vst.msk [vmem:[%s1755_s5 + $0x160] sm:$0xff] %vm907_vm0, %v1356_v17  ;;  %1377 = vpow2.f32 %v1107_v7  ;;  %v520_v23 = vadd.f32 %v1731_v3, %v452_v20 }
 0x13d   : > { %v519_v24 = vadd.f32 %v1731_v3, %v450_v21  ;;  %v1360_v25 = vpop.eup %1359  ;;  %955 = vst.msk [vmem:[%s1755_s5 + $0x178] sm:$0xff] %vm907_vm0, %v1358_v22  ;;  %1379 = vrcp.f32 %v768_v18 }
 0x13e   : > { %v1362_v26 = vpop.eup %1361  ;;  %954 = vst.msk [vmem:[%s1755_s5 + $0x170] sm:$0xff] %vm907_vm0, %v1360_v25  ;;  %1381 = vpow2.f32 %v1110_v16  ;;  %v1112_v27 = vmul.f32 -1.442695, %v520_v23 }
 0x13f   : > { %v1364_v28 = vpop.eup %1363  ;;  %v767_v29 = vadd.f32 1.0, %v1362_v26  ;;  %1383 = vpow2.f32 %v1109_v19  ;;  %v1111_v30 = vmul.f32 -1.442695, %v519_v24  ;;  %v456_v31 = vpop.xlane.xlu1 %455 }
 0x140   : > { %v454_v32 = vpop.xlane.xlu0 %453  ;;  %v1366_v33 = vpop.eup %1365  ;;  %v770_v34 = vadd.f32 1.0, %v1364_v28  ;;  %1385 = vpow2.f32 %v1112_v27  ;;  %v522_v35 = vadd.f32 %v1731_v3, %v456_v31 }
 0x141   : > { %v521_v36 = vadd.f32 %v1731_v3, %v454_v32  ;;  %v1368_v37 = vpop.eup %1367  ;;  %957 = vst.msk [vmem:[%s1755_s5 + $0x188] sm:$0xff] %vm907_vm0, %v1366_v33  ;;  %1387 = vrcp.f32 %v767_v29 }
 0x142   : > { %v1370_v38 = vpop.eup %1369  ;;  %956 = vst.msk [vmem:[%s1755_s5 + $0x180] sm:$0xff] %vm907_vm0, %v1368_v37  ;;  %1389 = vrcp.f32 %v770_v34  ;;  %v1114_v39 = vmul.f32 -1.442695, %v522_v35 }
 0x143   : > { %v1372_v40 = vpop.eup %1371  ;;  %v769_v41 = vadd.f32 1.0, %v1370_v38  ;;  %1391 = vpow2.f32 %v1111_v30  ;;  %v1113_v42 = vmul.f32 -1.442695, %v521_v36 }
 0x144   : > { %v1374_v43 = vpop.eup %1373  ;;  %v772_v44 = vadd.f32 1.0, %v1372_v40  ;;  %1393 = vpow2.f32 %v1114_v39 }
 0x145   : > { %v1376_v3 = vpop.eup %1375  ;;  %959 = vst.msk [vmem:[%s1755_s5 + $0x198] sm:$0xff] %vm907_vm0, %v1374_v43  ;;  %1395 = vrcp.f32 %v769_v41 }
 0x146   : > { %v1378_v45 = vpop.eup %1377  ;;  %958 = vst.msk [vmem:[%s1755_s5 + $0x190] sm:$0xff] %vm907_vm0, %v1376_v3  ;;  %1397 = vrcp.f32 %v772_v44 }
 0x147   : > { %v1380_v46 = vpop.eup %1379  ;;  %v771_v47 = vadd.f32 1.0, %v1378_v45  ;;  %1399 = vpow2.f32 %v1113_v42 }
 0x148   : > { %v1382_v48 = vpop.eup %1381  ;;  %961 = vst.msk [vmem:[%s1755_s5 + $0x1a8] sm:$0xff] %vm907_vm0, %v1380_v46 }
 0x149   : > { %v1384_v49 = vpop.eup %1383  ;;  %1401 = vrcp.f32 %v771_v47  ;;  %v774_v50 = vadd.f32 1.0, %v1382_v48 }
 0x14a   : > { %v1386_v51 = vpop.eup %1385  ;;  %v773_v52 = vadd.f32 1.0, %v1384_v49 }
 0x14b   : > { %v1388_v53 = vpop.eup %1387  ;;  %1403 = vrcp.f32 %v774_v50  ;;  %v776_v54 = vadd.f32 1.0, %v1386_v51 }
 0x14c   : > { %v1390_v55 = vpop.eup %1389  ;;  %960 = vst.msk [vmem:[%s1755_s5 + $0x1a0] sm:$0xff] %vm907_vm0, %v1388_v53  ;;  %1405 = vrcp.f32 %v773_v52 }
 0x14d   : > { %v1392_v56 = vpop.eup %1391  ;;  %963 = vst.msk [vmem:[%s1755_s5 + $0x1b8] sm:$0xff] %vm907_vm0, %v1390_v55  ;;  %1407 = vrcp.f32 %v776_v54 }
 0x14e   : > { %v1394_v57 = vpop.eup %1393  ;;  %v775_v58 = vadd.f32 1.0, %v1392_v56 }
 0x14f   : > { %v1396_v59 = vpop.eup %1395  ;;  %v778_v60 = vadd.f32 1.0, %v1394_v57 }
 0x150   : > { %v1398_v61 = vpop.eup %1397  ;;  %962 = vst.msk [vmem:[%s1755_s5 + $0x1b0] sm:$0xff] %vm907_vm0, %v1396_v59  ;;  %1409 = vrcp.f32 %v775_v58 }
 0x151   : > { %v1400_v62 = vpop.eup %1399  ;;  %965 = vst.msk [vmem:[%s1755_s5 + $0x1c8] sm:$0xff] %vm907_vm0, %v1398_v61  ;;  %1411 = vrcp.f32 %v778_v60 }
 0x152   : > { %v777_v63 = vadd.f32 1.0, %v1400_v62 }
 0x153   : > { %v1402_v0 = vpop.eup %1401 }
 0x154   : > { %964 = vst.msk [vmem:[%s1755_s5 + $0x1c0] sm:$0xff] %vm907_vm0, %v1402_v0  ;;  %1413 = vrcp.f32 %v777_v63 }
 0x155   : > { %v1404_v2 = vpop.eup %1403 }
 0x156   : > { %v1406_v4 = vpop.eup %1405  ;;  %967 = vst.msk [vmem:[%s1755_s5 + $0x1d8] sm:$0xff] %vm907_vm0, %v1404_v2 }
 0x157   : > { %v1408_v5 = vpop.eup %1407  ;;  %966 = vst.msk [vmem:[%s1755_s5 + $0x1d0] sm:$0xff] %vm907_vm0, %v1406_v4 }
 0x158   : > { %969 = vst.msk [vmem:[%s1755_s5 + $0x1e8] sm:$0xff] %vm907_vm0, %v1408_v5 }
 0x15a   : > { %v1410_v6 = vpop.eup %1409 }
 0x15b   : > { %v1412_v7 = vpop.eup %1411  ;;  %968 = vst.msk [vmem:[%s1755_s5 + $0x1e0] sm:$0xff] %vm907_vm0, %v1410_v6 }
 0x15c   : > { %971 = vst.msk [vmem:[%s1755_s5 + $0x1f8] sm:$0xff] %vm907_vm0, %v1412_v7 }
 0x15e   : > { %v1414_v8 = vpop.eup %1413 }
 0x15f   : > { %970 = vst.msk [vmem:[%s1755_s5 + $0x1f0] sm:$0xff] %vm907_vm0, %v1414_v8 }
 0x160 PF: > { %p14_p8 = scmp.ge.s32.totalorder %s1527_s18, 6   ;;  %s1955_s14 = smov %s1471_s15 }
 0x161   : > { %s1956_s15 = smov %s1475_s16  ;;  %s1957_s16 = smov %s1537_s21 }
 0x162   : > { %s1958_s17 = smov %s1527_s18  ;;  %16 = sbr.rel (!%p14_p8) target bundleno = 5 (0x5), region = 72 }
 0x169   :  { %994 = vsyncpa [#allocation4], 1 }
 0x16a   :  { %996 = vsyncpa [#allocation4 + $0x1], 1 }

</bundles_post_ra>
